<compile_context>
chip_gen: v6e
topology: v6e:2x2x1
jax: 0.10.0
libtpu: 0.0.40
codegen_flags: <defaults>
</compile_context>

<pallas_src>
import math

import jax
import jax.numpy as jnp
from jax.experimental import pallas as pl
from jax.experimental.pallas import tpu as pltpu


def _to2tuple(v):
    return (v, v) if isinstance(v, int) else tuple(v)


def _round_up(x, m):
    return ((x + m - 1) // m) * m


# ---------------------------------------------------------------------------
# Pallas kernel: one (tl, K) tile of patch rows @ resident (K, N) weight + bias
# ---------------------------------------------------------------------------
def _proj_kernel(p_ref, w_ref, b_ref, o_ref):
    # p_ref: (tl, K) bf16   w_ref: (K, N) bf16   b_ref: (1, N) f32
    # o_ref: (tl, N) out_dtype
    acc = jnp.dot(p_ref[...], w_ref[...], preferred_element_type=jnp.float32)
    o_ref[...] = (acc + b_ref[...]).astype(o_ref.dtype)


def _pick_row_tile(M, tm):
    """Row-tile size: <= M, multiple of 8 sublanes (or == M), >= 2 grid steps."""
    tl = max(8, min(tm, M))
    if tl < M:
        tl = (tl // 8) * 8
    # v7x has two TensorCores; make sure the 'parallel' grid has >= 2 steps.
    if pl.cdiv(M, tl) < 2 and M >= 16:
        tl = _round_up(pl.cdiv(M, 2), 8)
    return tl


def _projection(patches, w_mat, bias_row, *, out_dtype, tl, single_buffer):
    M, K = patches.shape
    Kw, N = w_mat.shape
    assert Kw == K and bias_row.shape == (1, N)
    n_m = pl.cdiv(M, tl)

    # Resident operands (constant index_map) never need a second buffer.
    resident_kwargs = dict(pipeline_mode=pl.Buffered(1)) if single_buffer else {}

    # Right-sized VMEM request (never the full 64 MiB of a v7x TensorCore):
    # double-buffered streamed tiles + single resident weight + headroom.
    working = (2 * tl * K * 2        # patch tiles (bf16, double-buffered)
               + 2 * tl * N * 2      # output tiles
               + K * N * 2           # resident weight
               + 2 * N * 4)          # bias
    vmem_limit = min(max(int(working * 1.25) + (8 << 20), 16 << 20), 48 << 20)

    return pl.pallas_call(
        _proj_kernel,
        out_shape=jax.ShapeDtypeStruct((M, N), out_dtype),
        grid_spec=pltpu.PrefetchScalarGridSpec(
            num_scalar_prefetch=0,
            grid=(n_m,),
            in_specs=[
                pl.BlockSpec((tl, K), lambda i: (i, 0)),                    # streamed rows
                pl.BlockSpec((K, N), lambda i: (0, 0), **resident_kwargs),  # weight
                pl.BlockSpec((1, N), lambda i: (0, 0), **resident_kwargs),  # bias
            ],
            out_specs=pl.BlockSpec((tl, N), lambda i: (i, 0)),
        ),
        compiler_params=pltpu.CompilerParams(
            dimension_semantics=("parallel",),
            vmem_limit_bytes=vmem_limit,
        ),
    )(patches, w_mat, bias_row)


# ---------------------------------------------------------------------------
# PatchEmbed forward: AdaptivePadding + patchify + projection + flatten
# ---------------------------------------------------------------------------
def patch_embed_forward(x, weight, bias, *, kernel_size, stride=None,
                        padding="corner", dilation=1,
                        compute_dtype=jnp.bfloat16, out_dtype=None,
                        tm=1024, single_buffer_resident=True):
    """x: (B, C, H, W) NCHW.  weight: (embed_dims, C, kh, kw).  bias: (embed_dims,).

    Returns (out, (H_out, W_out)) with out of shape (B, H_out*W_out, embed_dims),
    i.e. PyTorch's `x.flatten(2).transpose(1, 2)`.
    """
    if stride is None:
        stride = kernel_size
    kh, kw = _to2tuple(kernel_size)
    sh, sw = _to2tuple(stride)
    dh, dw = _to2tuple(dilation)
    assert (kh, kw) == (sh, sw) and (dh, dw) == (1, 1), \
        "patchify path assumes kernel_size == stride and dilation == 1"
    assert padding in ("corner", "same")

    B, C, H, W = x.shape
    embed_dims = weight.shape[0]
    if out_dtype is None:
        # Values are bf16-rounded on the MXU anyway; bf16 output halves the
        # output HBM write.  Pass out_dtype=x.dtype for PyTorch dtype parity.
        out_dtype = compute_dtype

    # ---- AdaptivePadding.getpadshape + pad ----------------------------------
    Ho, Wo = math.ceil(H / sh), math.ceil(W / sw)
    pad_h = max((Ho - 1) * sh + (kh - 1) * dh + 1 - H, 0)
    pad_w = max((Wo - 1) * sw + (kw - 1) * dw + 1 - W, 0)

    # Cast first so every later copy moves bf16 rather than f32; under jit the
    # cast / pad / patchify transpose fuse into a single pass over x.
    xc = x.astype(compute_dtype)
    if pad_h > 0 or pad_w > 0:
        if padding == "corner":
            cfg = ((0, 0), (0, 0), (0, pad_h), (0, pad_w))
        else:  # 'same'
            cfg = ((0, 0), (0, 0),
                   (pad_h // 2, pad_h - pad_h // 2),
                   (pad_w // 2, pad_w - pad_w // 2))
        xc = jnp.pad(xc, cfg)
    Hp, Wp = H + pad_h, W + pad_w
    assert Hp == Ho * kh and Wp == Wo * kw

    # ---- Patchify: the single remaining wrapper copy ------------------------
    # (B,C,Ho,kh,Wo,kw) -> (B,Ho,Wo,C,kh,kw) -> (M, K).  K-order (C, kh, kw)
    # matches PyTorch Conv2d weight flattening below.
    # TODO(synk): fold this rearrangement into the kernel (read NCHW directly)
    # once Mosaic handles the required sublane<->lane relayout.
    K = C * kh * kw
    L = Ho * Wo
    M = B * L
    patches = jnp.transpose(xc.reshape(B, C, Ho, kh, Wo, kw),
                            (0, 2, 4, 1, 3, 5)).reshape(M, K)

    # Weight (N, C, kh, kw) -> (K, N) bf16; bias stays f32 for the epilogue add.
    w_mat = jnp.transpose(weight.reshape(embed_dims, K)).astype(compute_dtype)
    b_row = bias.astype(jnp.float32).reshape(1, embed_dims)

    tl = _pick_row_tile(M, tm)
    out = _projection(patches, w_mat, b_row, out_dtype=out_dtype, tl=tl,
                      single_buffer=single_buffer_resident)
    out = out.reshape(B, L, embed_dims)   # leading-dim split: no copy
    # TODO(synk): norm_cfg is None in this config, so self.norm is skipped.
    return out, (Ho, Wo)


# ---------------------------------------------------------------------------
# Reference (XLA conv with the same bf16 operand rounding, f32 accumulation)
# ---------------------------------------------------------------------------
def _reference(x, weight, bias, *, kernel_size, padding="corner"):
    kh, kw = _to2tuple(kernel_size)
    B, C, H, W = x.shape
    Ho, Wo = math.ceil(H / kh), math.ceil(W / kw)
    pad_h, pad_w = max(Ho * kh - H, 0), max(Wo * kw - W, 0)
    if padding == "corner":
        cfg = ((0, 0), (0, 0), (0, pad_h), (0, pad_w))
    else:
        cfg = ((0, 0), (0, 0),
               (pad_h // 2, pad_h - pad_h // 2),
               (pad_w // 2, pad_w - pad_w // 2))
    xp = jnp.pad(x.astype(jnp.bfloat16), cfg)
    y = jax.lax.conv_general_dilated(
        xp, weight.astype(jnp.bfloat16), window_strides=(kh, kw),
        padding="VALID", dimension_numbers=("NCHW", "OIHW", "NCHW"),
        preferred_element_type=jnp.float32)
    y = y + bias.reshape(1, -1, 1, 1).astype(jnp.float32)
    E = y.shape[1]
    return y.reshape(B, E, Ho * Wo).transpose(0, 2, 1), (Ho, Wo)


if __name__ == "__main__":
    key = jax.random.PRNGKey(0)
    k_x, k_w, k_b = jax.random.split(key, 3)

    # Small config: in_channels=4, embed_dims=128 (one full lane group),
    # kernel=stride=8, spatial 30x30 so AdaptivePadding pads to 32x32
    # -> 4x4 = 16 patches per image, M = 2*16 = 32 rows, K = 4*8*8 = 256.
    B, C, H, W = 2, 4, 30, 30
    embed_dims, ksize = 128, 8

    x = jax.random.normal(k_x, (B, C, H, W), dtype=jnp.float32)
    weight = jax.random.normal(k_w, (embed_dims, C, ksize, ksize),
                               dtype=jnp.float32) * 0.02
    bias = jax.random.normal(k_b, (embed_dims,), dtype=jnp.float32) * 0.01

    def run(pad_mode, single_buffer):
        f = jax.jit(lambda a, b, c: patch_embed_forward(
            a, b, c, kernel_size=ksize, stride=ksize, padding=pad_mode,
            tm=8, single_buffer_resident=single_buffer))
        out, hw = f(x, weight, bias)
        return jax.block_until_ready(out), (int(hw[0]), int(hw[1]))

    # tm=8 -> 4 grid steps even at this tiny size, exercising the pipeline.
    try:
        out_c, size_c = run("corner", True)
        sb = True
    except Exception:
        # Fallback if this JAX build rejects single-buffered resident inputs.
        out_c, size_c = run("corner", False)
        sb = False

    ref_c, rsize_c = _reference(x, weight, bias, kernel_size=ksize,
                                padding="corner")
    assert out_c.shape == ref_c.shape == (B, 16, embed_dims)
    assert size_c == rsize_c == (4, 4)
    err_c = float(jnp.max(jnp.abs(out_c.astype(jnp.float32) - ref_c)))
    assert jnp.allclose(out_c.astype(jnp.float32), ref_c,
                        atol=2e-2, rtol=2e-2), err_c

    # 'same' adaptive-padding path (review correctness concern).
    out_s, size_s = run("same", sb)
    ref_s, rsize_s = _reference(x, weight, bias, kernel_size=ksize,
                                padding="same")
    assert out_s.shape == ref_s.shape and size_s == rsize_s == (4, 4)
    err_s = float(jnp.max(jnp.abs(out_s.astype(jnp.float32) - ref_s)))
    assert jnp.allclose(out_s.astype(jnp.float32), ref_s,
                        atol=2e-2, rtol=2e-2), err_s

    print("KERNEL_OK")
</pallas_src>

<mosaic_0001>
module attributes {stable_mosaic.version = 11 : i64} {
  func.func @_proj_kernel(%arg0: i32, %arg1: memref<8x256xbf16, #tpu.memory_space<vmem>>, %arg2: memref<256x128xbf16, #tpu.memory_space<vmem>>, %arg3: memref<1x128xf32, #tpu.memory_space<vmem>>, %arg4: memref<8x128xbf16, #tpu.memory_space<vmem>>) attributes {dimension_semantics = [#tpu.dimension_semantics<parallel>], iteration_bounds = array<i64: 4>, scalar_prefetch = 0 : i64, scratch_operands = 0 : i64, tpu.core_type = #tpu.core_type<tc>, window_params = [{transform_indices = @transform_0, window_bounds = array<i64: 8, 256>}, {pipeline_mode = #tpu.pipeline_mode<synchronous>, transform_indices = @transform_1, window_bounds = array<i64: 256, 128>}, {pipeline_mode = #tpu.pipeline_mode<synchronous>, transform_indices = @transform_2, window_bounds = array<i64: 1, 128>}, {transform_indices = @transform_3, window_bounds = array<i64: 8, 128>}]} {
    %c0 = arith.constant 0 : index
    %c0_0 = arith.constant 0 : index
    %0 = vector.load %arg1[%c0, %c0_0] : memref<8x256xbf16, #tpu.memory_space<vmem>>, vector<8x256xbf16>
    %c0_1 = arith.constant 0 : index
    %c0_2 = arith.constant 0 : index
    %1 = vector.load %arg2[%c0_1, %c0_2] : memref<256x128xbf16, #tpu.memory_space<vmem>>, vector<256x128xbf16>
    %cst = arith.constant dense<0.000000e+00> : vector<8x128xf32>
    %2 = tpu.matmul %0, %1, %cst {dimension_numbers = #tpu.dot_dimension_numbers<[1], [0], [0], [1], [0, 0, 1, 1], [], []>} : vector<8x256xbf16>, vector<256x128xbf16>, vector<8x128xf32> -> vector<8x128xf32>
    %c0_3 = arith.constant 0 : index
    %c0_4 = arith.constant 0 : index
    %3 = vector.load %arg3[%c0_3, %c0_4] : memref<1x128xf32, #tpu.memory_space<vmem>>, vector<1x128xf32>
    %4 = vector.broadcast %3 : vector<1x128xf32> to vector<8x128xf32>
    %5 = arith.addf %2, %4 : vector<8x128xf32>
    %6 = arith.truncf %5 : vector<8x128xf32> to vector<8x128xbf16>
    %c0_5 = arith.constant 0 : index
    %c0_6 = arith.constant 0 : index
    %7 = vector.load %arg4[%c0_5, %c0_6] : memref<8x128xbf16, #tpu.memory_space<vmem>>, vector<8x128xbf16>
    tpu.vector_store %arg4[%c0_5, %c0_6], %6 {strides = array<i32>} : memref<8x128xbf16, #tpu.memory_space<vmem>>, vector<8x128xbf16>,
    return
  }
  func.func @transform_0(%arg0: i32) -> (i32, i32) {
    %c0_i32 = arith.constant 0 : i32
    %c0_i32_0 = arith.constant 0 : i32
    return %arg0, %c0_i32 : i32, i32
  }
  func.func @transform_1(%arg0: i32) -> (i32, i32) {
    %c0_i32 = arith.constant 0 : i32
    %c0_i32_0 = arith.constant 0 : i32
    %c0_i32_1 = arith.constant 0 : i32
    return %c0_i32, %c0_i32_0 : i32, i32
  }
  func.func @transform_2(%arg0: i32) -> (i32, i32) {
    %c0_i32 = arith.constant 0 : i32
    %c0_i32_0 = arith.constant 0 : i32
    %c0_i32_1 = arith.constant 0 : i32
    return %c0_i32, %c0_i32_0 : i32, i32
  }
  func.func @transform_3(%arg0: i32) -> (i32, i32) {
    %c0_i32 = arith.constant 0 : i32
    %c0_i32_0 = arith.constant 0 : i32
    return %arg0, %c0_i32 : i32, i32
  }
}

module attributes {stable_mosaic.version = 11 : i64} {
  func.func @_proj_kernel(%arg0: i32, %arg1: memref<8x256xbf16, #tpu.memory_space<vmem>>, %arg2: memref<256x128xbf16, #tpu.memory_space<vmem>>, %arg3: memref<1x128xf32, #tpu.memory_space<vmem>>, %arg4: memref<8x128xbf16, #tpu.memory_space<vmem>>) attributes {dimension_semantics = [#tpu.dimension_semantics<parallel>], iteration_bounds = array<i64: 4>, scalar_prefetch = 0 : i64, scratch_operands = 0 : i64, tpu.core_type = #tpu.core_type<tc>, window_params = [{transform_indices = @transform_0, window_bounds = array<i64: 8, 256>}, {pipeline_mode = #tpu.pipeline_mode<synchronous>, transform_indices = @transform_1, window_bounds = array<i64: 256, 128>}, {pipeline_mode = #tpu.pipeline_mode<synchronous>, transform_indices = @transform_2, window_bounds = array<i64: 1, 128>}, {transform_indices = @transform_3, window_bounds = array<i64: 8, 128>}]} {
    %c0 = arith.constant 0 : index
    %c0_0 = arith.constant 0 : index
    %0 = vector.load %arg1[%c0, %c0_0] : memref<8x256xbf16, #tpu.memory_space<vmem>>, vector<8x256xbf16>
    %c0_1 = arith.constant 0 : index
    %c0_2 = arith.constant 0 : index
    %1 = vector.load %arg2[%c0_1, %c0_2] : memref<256x128xbf16, #tpu.memory_space<vmem>>, vector<256x128xbf16>
    %cst = arith.constant dense<0.000000e+00> : vector<8x128xf32>
    %2 = tpu.matmul %0, %1, %cst {dimension_numbers = #tpu.dot_dimension_numbers<[1], [0], [0], [1], [0, 0, 1, 1], [], []>} : vector<8x256xbf16>, vector<256x128xbf16>, vector<8x128xf32> -> vector<8x128xf32>
    %c0_3 = arith.constant 0 : index
    %c0_4 = arith.constant 0 : index
    %3 = vector.load %arg3[%c0_3, %c0_4] : memref<1x128xf32, #tpu.memory_space<vmem>>, vector<1x128xf32>
    %4 = vector.broadcast %3 : vector<1x128xf32> to vector<8x128xf32>
    %5 = arith.addf %2, %4 : vector<8x128xf32>
    %6 = arith.truncf %5 : vector<8x128xf32> to vector<8x128xbf16>
    %c0_5 = arith.constant 0 : index
    %c0_6 = arith.constant 0 : index
    %7 = vector.load %arg4[%c0_5, %c0_6] : memref<8x128xbf16, #tpu.memory_space<vmem>>, vector<8x128xbf16>
    tpu.vector_store %arg4[%c0_5, %c0_6], %6 {strides = array<i32>} : memref<8x128xbf16, #tpu.memory_space<vmem>>, vector<8x128xbf16>,
    return
  }
  func.func @transform_0(%arg0: i32) -> (i32, i32) {
    %c0_i32 = arith.constant 0 : i32
    %c0_i32_0 = arith.constant 0 : i32
    return %arg0, %c0_i32 : i32, i32
  }
  func.func @transform_1(%arg0: i32) -> (i32, i32) {
    %c0_i32 = arith.constant 0 : i32
    %c0_i32_0 = arith.constant 0 : i32
    %c0_i32_1 = arith.constant 0 : i32
    return %c0_i32, %c0_i32_0 : i32, i32
  }
  func.func @transform_2(%arg0: i32) -> (i32, i32) {
    %c0_i32 = arith.constant 0 : i32
    %c0_i32_0 = arith.constant 0 : i32
    %c0_i32_1 = arith.constant 0 : i32
    return %c0_i32, %c0_i32_0 : i32, i32
  }
  func.func @transform_3(%arg0: i32) -> (i32, i32) {
    %c0_i32 = arith.constant 0 : i32
    %c0_i32_0 = arith.constant 0 : i32
    return %arg0, %c0_i32 : i32, i32
  }
}

</mosaic_0001>

<bundles_post_ra>
// kernel: _lambda_.1
= control target key start
LH: loop header
LB: loop body
LE: loop exit
PB: predicated region body
PF: predicated region fallthrough
CT: control target
= control target key end

     0   :  { %8 = vsyncpa [#allocation3], 0  ;;  %s759_s0 = inlined_call_operand.vmem [shape: bf16[32,256], index: 0, kind: input, shape index: {}]   ;;  %s760_s1 = inlined_call_operand.vmem [shape: bf16[256,128], index: 1, kind: input, shape index: {}]   ;;  %s761_s2 = inlined_call_operand.vmem [shape: f32[1,128], index: 2, kind: input, shape index: {}]   ;;  %s762_s3 = inlined_call_operand.hbm [shape: bf16[32,128], index: 3, kind: output, shape index: {}]  }
   0x1   :  { %10 = vsyncpa [#allocation3 + $0x1], 0  ;;  %s621_s12 = smov 0   ;;  %s623_s13 = smov 0  }
   0x2   :  { %s625_s14 = smov 0   ;;  %s627_s15 = smov 0  }
   0x3 LB: > { %s642_s16 = sadd.s32 4294967295, %s598_s15   ;;  %s428_s17 = sadd.s32 4294967294, %s598_s15   ;;  %s598_s15 = sphi %s627_s15, %s768_s15   ;;  %s594_s14 = sphi %s625_s14, %s767_s14   ;;  %s590_s13 = sphi %s623_s13, %s766_s13   ;;  %s586_s12 = sphi %s621_s12, %s765_s12  }
   0x4   : > { %s646_s18 = sadd.s32 1, %s598_s15   ;;  %s91_s19 = sadd.s32 1, %s594_s14 }
   0x5   : > { %s88_s20 = ssub.s32 %s598_s15, %s646_s18  ;;  %p101_p0 = scmp.ne.s32.totalorder %s594_s14, %s590_s13 }
   0x6   : > { %p89_p1 = scmp.eq.s32.totalorder %s88_s20, 0  ;;  %p102_p2 = scmp.eq.s32.totalorder %s642_s16, 3 }
   0x7   : > { %p107_p3 = scmp.ne.s32.totalorder %s590_s13, %s586_s12  ;;  %p108_p4 = scmp.eq.s32.totalorder %s428_s17, 3 }
   0x8   : > { %s657_s21 = scalar_select %p89_p1, %s594_s14, %s91_s19  }
   0x9   : > { %p659_p5 = por %p102_p2, %p101_p0  ;;  %p663_p6 = por %p108_p4, %p107_p3 }
   0xa   : > { %p431_p7 = scmp.ge.s32.totalorder %s598_s15, 1  ;;  %p140_p8 = scmp.lt.s32.totalorder %s598_s15, 5 }
   0xc   : > { %p141_p9 = pnand %p431_p7, %p140_p8 }
   0xd   : > { %p164_p10 = scmp.lt.s32.totalorder (!%p141_p9), %s642_s16, 3  ;;  %s161_s25 = sand.u32 (!%p141_p9), 1, %s590_s13  }
   0xe   : > { %144 = sbr.rel (%p141_p9) target bundleno = 266 (0x10a), region = 32  ;;  %s432_s26 = sshll.u32 (!%p141_p9), %s161_s25, 2 }
   0xf   : > { %s455_s29 = sshll.u32 (!%p141_p9), %s642_s16, 6  ;;  %s163_s30 = scalar_lea.vmem (!%p141_p9), [#allocation2], %s432_s26 }
  0x10   : > { %s369_s4 = sshll.u32 (!%p141_p9), %s163_s30, 4  ;;  %s356_s8 = scalar_lea.sflag (!%p141_p9), [#allocation3], %s161_s25  ;;  %s370_s4 = int_to_ptr.vmem [resolvable:$true] %s369_s4 }
  0x11   : > { %s538_s9 = scalar_lea.vmem (!%p141_p9), %s370_s4, 64  ;;  %s600_s10 = smov (!%p141_p9), [#allocation2]  }
  0x12   : > { %p539_p11 = scmp.ne.s32.totalorder (!%p141_p9), %s370_s4, %s538_s9  ;;  %s542_s11 = sshll.u32 (!%p141_p9), %s600_s10, 4  ;;  %s543_s11 = int_to_ptr.vmem [resolvable:$false] %s542_s11 }
  0x13   : > { %v520_v0 = vld [vmem:[%s760_s1 + $0x78] sm:$0xff]   ;;  %v522_v2 = vld [vmem:[%s760_s1 + $0x70] sm:$0xff]   ;;  %v524_v4 = vld [vmem:[%s760_s1 + $0x68] sm:$0xff]   ;;  %s165_s7 = scalar_select %p164_p10, %s642_s16, 3 }
  0x14   : > { %v521_v1 = vld [vmem:[%s760_s1 + $0x38] sm:$0xff]   ;;  %459 = vmatprep.subr.bf16.mxu0 %v520_v0  ;;  %v523_v3 = vld [vmem:[%s760_s1 + $0x30] sm:$0xff]   ;;  %v525_v5 = vld [vmem:[%s760_s1 + $0x28] sm:$0xff]   ;;  %p540_p12 = pnand %p539_p11, %p659_p5  ;;  %s544_s16 = scalar_lea.vmem %s543_s11, 128 }
  0x15   : > { %460 = vmatpush3.bf16.msra.mxu0 %v521_v1  ;;  %v526_v6 = vld [vmem:[%s760_s1 + $0x60] sm:$0xff]   ;;  %s458_s17 = sshll.u32 %s165_s7, 3  ;;  %v528_v8 = vld [vmem:[%s760_s1 + $0x58] sm:$0xff]   ;;  %v530_v10 = vld [vmem:[%s760_s1 + $0x50] sm:$0xff]   ;;  %s367_s7 = scalar_lea.hbm %s762_s3, %s455_s29 }
  0x16   : > { %461 = vmatprep.subr.bf16.mxu0 %v522_v2  ;;  %v527_v7 = vld [vmem:[%s760_s1 + $0x20] sm:$0xff]   ;;  %s168_s28 = scalar_lea.vmem %s759_s0, %s458_s17  ;;  %v529_v9 = vld [vmem:[%s760_s1 + $0x18] sm:$0xff]   ;;  %v531_v13 = vld [vmem:[%s760_s1 + $0x10] sm:$0xff]   ;;  %p541_p13 = pneg %p540_p12 }
  0x17   : > { %v170_v11 = vld [vmem:[%s168_s28] sm:$0xff]  ;;  %v532_v14 = vld [vmem:[%s760_s1 + $0x48] sm:$0xff]   ;;  %p545_p0 = scmp.lt.s32.totalorder %s370_s4, %s543_s11  ;;  %p546_p1 = scmp.lt.s32.totalorder %s544_s16, %s538_s9 }
  0x18   : > { %v437_v12 = vcombine.high %v170_v11, %v170_v11  ;;  %v533_v15 = vld [vmem:[%s760_s1 + $0x8] sm:$0xff]   ;;  %v534_v16 = vld [vmem:[%s760_s1 + $0x40] sm:$0xff]   ;;  %v436_v18 = vcombine.low %v170_v11, %v170_v11 }
  0x19   : > { %462 = vmatpush3.bf16.msra.mxu0 %v523_v3  ;;  %v535_v17 = vld [vmem:[%s760_s1] sm:$0xff]   ;;  %p547_p2 = por %p546_p1, %p545_p0 }
  0x1a   : > { %463 = vmatprep.subr.bf16.mxu0 %v524_v4  ;;  %345 = vmatprep.mubr.bf16.mxu0 %v437_v12  ;;  %v435_v20 = vld [vmem:[%s761_s2] ss:$0 sm:$0xff] }
  0x1b   : > { %p548_p3 = pnand %p547_p2, %p541_p13 }
  0x1d   : > { %464 = vmatpush3.bf16.msra.mxu0 %v525_v5 }
  0x1e   : > { %465 = vmatprep.subr.bf16.mxu0 %v526_v6 }
  0x21   : > { %466 = vmatpush3.bf16.msra.mxu0 %v527_v7 }
  0x22   : > { %467 = vmatprep.subr.bf16.mxu0 %v528_v8 }
  0x25   : > { %468 = vmatpush3.bf16.msra.mxu0 %v529_v9 }
  0x26   : > { %469 = vmatprep.subr.bf16.mxu0 %v530_v10 }
  0x29   : > { %470 = vmatpush3.bf16.msra.mxu0 %v531_v13 }
  0x2a   : > { %471 = vmatprep.subr.bf16.mxu0 %v532_v14 }
  0x2d   : > { %472 = vmatpush3.bf16.msra.mxu0 %v533_v15 }
  0x2e   : > { %473 = vmatprep.subr.bf16.mxu0 %v534_v16 }
  0x31   : > { %474 = vmatpush3.bf16.msra.mxu0 %v535_v17 }
  0x34   : > { %346 = vmatmul.mubr.bf16.vlgmr.msra.gmra.mxu0 %v436_v18 }
  0xf4   : > { %v475_v19 = vpop.f32.mrf.mxu0 }
  0xf6   : > { %v476_v21 = vpop.f32.mrf.mxu0 }
  0xf7   : > { %v477_v22 = vadd.f32 %v476_v21, %v475_v19 }
  0xf8   : > { %v478_v23 = vpop.f32.mrf.mxu0 }
  0xf9   : > { %v348_v24 = vadd.f32 %v477_v22, %v435_v20 }
  0xfa   : > { %v479_v25 = vpop.f32.mrf.mxu0 }
  0xfb   : > { %v353_v26 = vpack.c.bf16 %v348_v24, %v348_v24 }
  0xfd   : > { %354 = vst [vmem:[%s163_s30] sm:$0xf] %v353_v26 }
  0xfe   : > { %551 = shalt.err (!%p548_p3)
}
  0xff   : > { %s552_s17 = scalar_lea.hbm %s367_s7, 64  ;;  %s556_s24 = scalar_lea.hbm %s762_s3, 256 }
 0x100   : > { %p553_p4 = scmp.ne.s32.totalorder %s367_s7, %s552_s17  ;;  %p557_p9 = scmp.lt.s32.totalorder %s367_s7, %s762_s3 }
 0x101   : > { %p558_p10 = scmp.lt.s32.totalorder %s556_s24, %s552_s17 }
 0x102   : > { %p554_p7 = pnand %p553_p4, %p659_p5 }
 0x103   : > { %p559_p11 = por %p558_p10, %p557_p9 }
 0x104   : > { %p555_p8 = pneg %p554_p7 }
 0x106   : > { %p560_p12 = pnand %p559_p11, %p555_p8 }
 0x108   : > { %563 = shalt.err (!%p560_p12)
}
 0x109   : > { %481 = dma.vmem_to_hbm [thread:$0]  (%p659_p5), %s370_s4, 64, %s367_s7, %s356_s8  }
 0x10a PF: > { %p487_p13 = scmp.ge.s32.totalorder %s598_s15, 2  ;;  %s381_s27 = sand.u32 1, %s586_s12  }
 0x10b   : > { %s382_s28 = scalar_lea.sflag [#allocation3], %s381_s27 }
 0x10c   : > { %p484_p0 = pnand %p487_p13, %p663_p6 }
 0x10e   : > { %p485_p1 = pneg %p484_p0 }
 0x110   : > { %581 = dma.done.wait (%p485_p1), %s382_s28, 64  }
 0x111   : > { %583 = vsyncadd (%p485_p1), %s382_s28, 4294967232  ;;  %p13_p2 = scmp.ge.s32.totalorder %s646_s18, 6   ;;  %s765_s12 = smov %s590_s13 }
 0x112   : > { %s766_s13 = smov %s594_s14  ;;  %s767_s14 = smov %s657_s21 }
 0x113   : > { %s768_s15 = smov %s646_s18  ;;  %15 = sbr.rel (!%p13_p2) target bundleno = 3 (0x3), region = 67 }
 0x118   :  { %387 = vsyncpa [#allocation3], 1 }
 0x119   :  { %389 = vsyncpa [#allocation3 + $0x1], 1 }

// kernel: _lambda_.1
= control target key start
LH: loop header
LB: loop body
LE: loop exit
PB: predicated region body
PF: predicated region fallthrough
CT: control target
= control target key end

     0   :  { %8 = vsyncpa [#allocation3], 0  ;;  %s759_s0 = inlined_call_operand.vmem [shape: bf16[32,256], index: 0, kind: input, shape index: {}]   ;;  %s760_s1 = inlined_call_operand.vmem [shape: bf16[256,128], index: 1, kind: input, shape index: {}]   ;;  %s761_s2 = inlined_call_operand.vmem [shape: f32[1,128], index: 2, kind: input, shape index: {}]   ;;  %s762_s3 = inlined_call_operand.hbm [shape: bf16[32,128], index: 3, kind: output, shape index: {}]  }
   0x1   :  { %10 = vsyncpa [#allocation3 + $0x1], 0  ;;  %s621_s12 = smov 0   ;;  %s623_s13 = smov 0  }
   0x2   :  { %s625_s14 = smov 0   ;;  %s627_s15 = smov 0  }
   0x3 LB: > { %s642_s16 = sadd.s32 4294967295, %s598_s15   ;;  %s428_s17 = sadd.s32 4294967294, %s598_s15   ;;  %s598_s15 = sphi %s627_s15, %s768_s15   ;;  %s594_s14 = sphi %s625_s14, %s767_s14   ;;  %s590_s13 = sphi %s623_s13, %s766_s13   ;;  %s586_s12 = sphi %s621_s12, %s765_s12  }
   0x4   : > { %s646_s18 = sadd.s32 1, %s598_s15   ;;  %s91_s19 = sadd.s32 1, %s594_s14 }
   0x5   : > { %s88_s20 = ssub.s32 %s598_s15, %s646_s18  ;;  %p101_p0 = scmp.ne.s32.totalorder %s594_s14, %s590_s13 }
   0x6   : > { %p89_p1 = scmp.eq.s32.totalorder %s88_s20, 0  ;;  %p102_p2 = scmp.eq.s32.totalorder %s642_s16, 3 }
   0x7   : > { %p107_p3 = scmp.ne.s32.totalorder %s590_s13, %s586_s12  ;;  %p108_p4 = scmp.eq.s32.totalorder %s428_s17, 3 }
   0x8   : > { %s657_s21 = scalar_select %p89_p1, %s594_s14, %s91_s19  }
   0x9   : > { %p659_p5 = por %p102_p2, %p101_p0  ;;  %p663_p6 = por %p108_p4, %p107_p3 }
   0xa   : > { %p431_p7 = scmp.ge.s32.totalorder %s598_s15, 1  ;;  %p140_p8 = scmp.lt.s32.totalorder %s598_s15, 5 }
   0xc   : > { %p141_p9 = pnand %p431_p7, %p140_p8 }
   0xd   : > { %p164_p10 = scmp.lt.s32.totalorder (!%p141_p9), %s642_s16, 3  ;;  %s161_s25 = sand.u32 (!%p141_p9), 1, %s590_s13  }
   0xe   : > { %144 = sbr.rel (%p141_p9) target bundleno = 266 (0x10a), region = 32  ;;  %s432_s26 = sshll.u32 (!%p141_p9), %s161_s25, 2 }
   0xf   : > { %s455_s29 = sshll.u32 (!%p141_p9), %s642_s16, 6  ;;  %s163_s30 = scalar_lea.vmem (!%p141_p9), [#allocation2], %s432_s26 }
  0x10   : > { %s369_s4 = sshll.u32 (!%p141_p9), %s163_s30, 4  ;;  %s356_s8 = scalar_lea.sflag (!%p141_p9), [#allocation3], %s161_s25  ;;  %s370_s4 = int_to_ptr.vmem [resolvable:$true] %s369_s4 }
  0x11   : > { %s538_s9 = scalar_lea.vmem (!%p141_p9), %s370_s4, 64  ;;  %s600_s10 = smov (!%p141_p9), [#allocation2]  }
  0x12   : > { %p539_p11 = scmp.ne.s32.totalorder (!%p141_p9), %s370_s4, %s538_s9  ;;  %s542_s11 = sshll.u32 (!%p141_p9), %s600_s10, 4  ;;  %s543_s11 = int_to_ptr.vmem [resolvable:$false] %s542_s11 }
  0x13   : > { %v520_v0 = vld [vmem:[%s760_s1 + $0x78] sm:$0xff]   ;;  %v522_v2 = vld [vmem:[%s760_s1 + $0x70] sm:$0xff]   ;;  %v524_v4 = vld [vmem:[%s760_s1 + $0x68] sm:$0xff]   ;;  %s165_s7 = scalar_select %p164_p10, %s642_s16, 3 }
  0x14   : > { %v521_v1 = vld [vmem:[%s760_s1 + $0x38] sm:$0xff]   ;;  %459 = vmatprep.subr.bf16.mxu0 %v520_v0  ;;  %v523_v3 = vld [vmem:[%s760_s1 + $0x30] sm:$0xff]   ;;  %v525_v5 = vld [vmem:[%s760_s1 + $0x28] sm:$0xff]   ;;  %p540_p12 = pnand %p539_p11, %p659_p5  ;;  %s544_s16 = scalar_lea.vmem %s543_s11, 128 }
  0x15   : > { %460 = vmatpush3.bf16.msra.mxu0 %v521_v1  ;;  %v526_v6 = vld [vmem:[%s760_s1 + $0x60] sm:$0xff]   ;;  %s458_s17 = sshll.u32 %s165_s7, 3  ;;  %v528_v8 = vld [vmem:[%s760_s1 + $0x58] sm:$0xff]   ;;  %v530_v10 = vld [vmem:[%s760_s1 + $0x50] sm:$0xff]   ;;  %s367_s7 = scalar_lea.hbm %s762_s3, %s455_s29 }
  0x16   : > { %461 = vmatprep.subr.bf16.mxu0 %v522_v2  ;;  %v527_v7 = vld [vmem:[%s760_s1 + $0x20] sm:$0xff]   ;;  %s168_s28 = scalar_lea.vmem %s759_s0, %s458_s17  ;;  %v529_v9 = vld [vmem:[%s760_s1 + $0x18] sm:$0xff]   ;;  %v531_v13 = vld [vmem:[%s760_s1 + $0x10] sm:$0xff]   ;;  %p541_p13 = pneg %p540_p12 }
  0x17   : > { %v170_v11 = vld [vmem:[%s168_s28] sm:$0xff]  ;;  %v532_v14 = vld [vmem:[%s760_s1 + $0x48] sm:$0xff]   ;;  %p545_p0 = scmp.lt.s32.totalorder %s370_s4, %s543_s11  ;;  %p546_p1 = scmp.lt.s32.totalorder %s544_s16, %s538_s9 }
  0x18   : > { %v437_v12 = vcombine.high %v170_v11, %v170_v11  ;;  %v533_v15 = vld [vmem:[%s760_s1 + $0x8] sm:$0xff]   ;;  %v534_v16 = vld [vmem:[%s760_s1 + $0x40] sm:$0xff]   ;;  %v436_v18 = vcombine.low %v170_v11, %v170_v11 }
  0x19   : > { %462 = vmatpush3.bf16.msra.mxu0 %v523_v3  ;;  %v535_v17 = vld [vmem:[%s760_s1] sm:$0xff]   ;;  %p547_p2 = por %p546_p1, %p545_p0 }
  0x1a   : > { %463 = vmatprep.subr.bf16.mxu0 %v524_v4  ;;  %345 = vmatprep.mubr.bf16.mxu0 %v437_v12  ;;  %v435_v20 = vld [vmem:[%s761_s2] ss:$0 sm:$0xff] }
  0x1b   : > { %p548_p3 = pnand %p547_p2, %p541_p13 }
  0x1d   : > { %464 = vmatpush3.bf16.msra.mxu0 %v525_v5 }
  0x1e   : > { %465 = vmatprep.subr.bf16.mxu0 %v526_v6 }
  0x21   : > { %466 = vmatpush3.bf16.msra.mxu0 %v527_v7 }
  0x22   : > { %467 = vmatprep.subr.bf16.mxu0 %v528_v8 }
  0x25   : > { %468 = vmatpush3.bf16.msra.mxu0 %v529_v9 }
  0x26   : > { %469 = vmatprep.subr.bf16.mxu0 %v530_v10 }
  0x29   : > { %470 = vmatpush3.bf16.msra.mxu0 %v531_v13 }
  0x2a   : > { %471 = vmatprep.subr.bf16.mxu0 %v532_v14 }
  0x2d   : > { %472 = vmatpush3.bf16.msra.mxu0 %v533_v15 }
  0x2e   : > { %473 = vmatprep.subr.bf16.mxu0 %v534_v16 }
  0x31   : > { %474 = vmatpush3.bf16.msra.mxu0 %v535_v17 }
  0x34   : > { %346 = vmatmul.mubr.bf16.vlgmr.msra.gmra.mxu0 %v436_v18 }
  0xf4   : > { %v475_v19 = vpop.f32.mrf.mxu0 }
  0xf6   : > { %v476_v21 = vpop.f32.mrf.mxu0 }
  0xf7   : > { %v477_v22 = vadd.f32 %v476_v21, %v475_v19 }
  0xf8   : > { %v478_v23 = vpop.f32.mrf.mxu0 }
  0xf9   : > { %v348_v24 = vadd.f32 %v477_v22, %v435_v20 }
  0xfa   : > { %v479_v25 = vpop.f32.mrf.mxu0 }
  0xfb   : > { %v353_v26 = vpack.c.bf16 %v348_v24, %v348_v24 }
  0xfd   : > { %354 = vst [vmem:[%s163_s30] sm:$0xf] %v353_v26 }
  0xfe   : > { %551 = shalt.err (!%p548_p3)
}
  0xff   : > { %s552_s17 = scalar_lea.hbm %s367_s7, 64  ;;  %s556_s24 = scalar_lea.hbm %s762_s3, 256 }
 0x100   : > { %p553_p4 = scmp.ne.s32.totalorder %s367_s7, %s552_s17  ;;  %p557_p9 = scmp.lt.s32.totalorder %s367_s7, %s762_s3 }
 0x101   : > { %p558_p10 = scmp.lt.s32.totalorder %s556_s24, %s552_s17 }
 0x102   : > { %p554_p7 = pnand %p553_p4, %p659_p5 }
 0x103   : > { %p559_p11 = por %p558_p10, %p557_p9 }
 0x104   : > { %p555_p8 = pneg %p554_p7 }
 0x106   : > { %p560_p12 = pnand %p559_p11, %p555_p8 }
 0x108   : > { %563 = shalt.err (!%p560_p12)
}
 0x109   : > { %481 = dma.vmem_to_hbm [thread:$0]  (%p659_p5), %s370_s4, 64, %s367_s7, %s356_s8  }
 0x10a PF: > { %p487_p13 = scmp.ge.s32.totalorder %s598_s15, 2  ;;  %s381_s27 = sand.u32 1, %s586_s12  }
 0x10b   : > { %s382_s28 = scalar_lea.sflag [#allocation3], %s381_s27 }
 0x10c   : > { %p484_p0 = pnand %p487_p13, %p663_p6 }
 0x10e   : > { %p485_p1 = pneg %p484_p0 }
 0x110   : > { %581 = dma.done.wait (%p485_p1), %s382_s28, 64  }
 0x111   : > { %583 = vsyncadd (%p485_p1), %s382_s28, 4294967232  ;;  %p13_p2 = scmp.ge.s32.totalorder %s646_s18, 6   ;;  %s765_s12 = smov %s590_s13 }
 0x112   : > { %s766_s13 = smov %s594_s14  ;;  %s767_s14 = smov %s657_s21 }
 0x113   : > { %s768_s15 = smov %s646_s18  ;;  %15 = sbr.rel (!%p13_p2) target bundleno = 3 (0x3), region = 67 }
 0x118   :  { %387 = vsyncpa [#allocation3], 1 }
 0x119   :  { %389 = vsyncpa [#allocation3 + $0x1], 1 }

</bundles_post_ra>
